<compile_context>
chip_gen: v6e
topology: v6e:2x2x1
jax: 0.10.0
libtpu: 0.0.40
codegen_flags: <defaults>
</compile_context>

<pallas_src>
import functools

import jax
import jax.numpy as jnp
from jax import lax
from jax.experimental import pallas as pl
from jax.experimental.pallas import tpu as pltpu

_EPS = 1e-8          # torch cosine_similarity default eps
_OUT_LANES = 128     # lane-dense per-tile output row


def _round_up(x, m):
    return (x + m - 1) // m * m


def _round_down(x, m):
    return (x // m) * m


def _cdiv(a, b):
    return (a + b - 1) // b


def _tpu_caps():
    """Returns (vmem_bytes_per_core, multi_core) with conservative fallbacks."""
    vmem = None
    try:
        vmem = int(pltpu.get_tpu_info().vmem_capacity_bytes)
    except Exception:
        vmem = None
    kind = ""
    try:
        kind = jax.devices()[0].device_kind.lower()
    except Exception:
        kind = ""
    if vmem is None:
        vmem = 64 * 1024 * 1024                 # conservative (v7x-sized)
    if "v7" in kind or "7x" in kind:
        multi_core = True                       # v7x: 2 TensorCores / chip
    elif kind:
        multi_core = False                      # v5e / v6e / older: 1 TC
    else:
        multi_core = vmem < 100 * 1024 * 1024   # fall back to VMEM heuristic
    return vmem, multi_core


def _criterion_inv_kernel(x1_ref, x2_ref, out_ref, *, tb, rb, batch, num_tiles,
                          accumulate):
    i = pl.program_id(0)
    num_chunks = tb // rb
    eps2 = jnp.float32(_EPS) * jnp.float32(_EPS)
    base = i * tb

    def reduce_rows(a, b, row0, carry):
        relu_acc, sum_acc = carry
        a = a.astype(jnp.float32)
        b = b.astype(jnp.float32)
        dot = jnp.sum(a * b, axis=1, keepdims=True)   # [rb, 1]
        ss1 = jnp.sum(a * a, axis=1, keepdims=True)
        ss2 = jnp.sum(b * b, axis=1, keepdims=True)
        # dot / max(||a||*||b||, eps) == dot * rsqrt(max(ss1*ss2, eps^2))
        sims = dot * lax.rsqrt(jnp.maximum(ss1 * ss2, eps2))
        # Mask rows past the true batch (padded last tile) after the rsqrt so
        # garbage rows can never reach the sums.
        row = row0 + lax.broadcasted_iota(jnp.int32, sims.shape, 0)
        sims = jnp.where(row < batch, sims, 0.0)
        return (relu_acc + jnp.sum(jnp.maximum(sims, 0.0), keepdims=True),
                sum_acc + jnp.sum(sims, keepdims=True))

    init = (jnp.zeros((1, 1), jnp.float32), jnp.zeros((1, 1), jnp.float32))
    if num_chunks == 1:
        relu_acc, sum_acc = reduce_rows(x1_ref[...], x2_ref[...], base, init)
    else:
        def chunk_body(c, carry):
            r0 = pl.multiple_of(c * rb, rb)
            return reduce_rows(x1_ref[pl.ds(r0, rb), :],
                               x2_ref[pl.ds(r0, rb), :], base + r0, carry)

        relu_acc, sum_acc = lax.fori_loop(0, num_chunks, chunk_body, init,
                                          unroll=(num_chunks <= 8))

    # One lane-dense row: lane 0 = sum(relu(sims)), lane 1 = sum(sims).
    lane = lax.broadcasted_iota(jnp.int32, (1, _OUT_LANES), 1)
    tile_row = (jnp.where(lane == 0, relu_acc, 0.0)
                + jnp.where(lane == 1, sum_acc, 0.0))

    if accumulate:
        # Single-TC path: resident accumulator, single final write-back.
        @pl.when(i == 0)
        def _():
            out_ref[...] = jnp.zeros_like(out_ref)

        out_ref[...] += tile_row

        @pl.when(i == num_tiles - 1)
        def _():
            out_ref[...] = out_ref[...] * jnp.float32(1.0 / batch)
    else:
        # v7x path: independent per-tile partials (grid axis "parallel").
        out_ref[...] = tile_row


def criterion_inv(x1, x2, *, block_rows=None, chunk_rows=None, multi_core=None):
    """Returns (max(sims, 0).mean(), sims.mean()) as float32 scalars."""
    assert x1.shape == x2.shape and x1.ndim == 2
    B, D = x1.shape
    itemsize = jnp.dtype(x1.dtype).itemsize
    sublane = {1: 32, 2: 16}.get(itemsize, 8)       # dtype-native sublane tile

    vmem_bytes, auto_multi_core = _tpu_caps()
    if multi_core is None:
        multi_core = auto_multi_core
    if vmem_bytes >= 100 * 1024 * 1024:             # v5e / v6e: 128 MiB VMEM
        dbuf_budget = 56 * 1024 * 1024
        vmem_limit = 96 * 1024 * 1024
    else:                                           # v7x-like: 64 MiB per TC
        dbuf_budget = 28 * 1024 * 1024
        vmem_limit = 48 * 1024 * 1024

    if B < sublane:
        # Tiny batch: one full-array block (block shape == array shape).
        rb = tb = B
    else:
        # Inner row chunk: bounds in-kernel f32 temporaries (~1 MiB each)
        # independently of the outer tile size.
        rb = _round_down((1 << 20) // (4 * D), sublane)
        rb = max(sublane, min(2048, rb))
        if chunk_rows is not None:
            rb = max(sublane, _round_up(chunk_rows, sublane))
        rb = min(rb, _round_down(B, sublane))

        # Outer batch tile: sized against double-buffered input bytes only
        # (2 inputs x 2 pipeline buffers).
        if block_rows is not None:
            tb = _round_up(block_rows, sublane)
        else:
            tb = dbuf_budget // (2 * 2 * D * itemsize)
        tb = max(rb, _round_down(tb, rb))
        tb = min(tb, max(rb, _round_down(B, rb)))
        if multi_core and B >= 2 * rb:
            # Keep >= 2 tiles so both v7x TensorCores share the stream.
            half = _round_up(_cdiv(B, 2), rb)
            tb = min(tb, max(rb, min(half, _round_down(B, rb))))

    num_tiles = _cdiv(B, tb)
    accumulate = not multi_core

    kernel = functools.partial(
        _criterion_inv_kernel,
        tb=tb, rb=rb, batch=B, num_tiles=num_tiles, accumulate=accumulate)

    out_rows = 1 if accumulate else num_tiles
    out_index_map = (lambda i: (0, 0)) if accumulate else (lambda i: (i, 0))

    out = pl.pallas_call(
        kernel,
        out_shape=jax.ShapeDtypeStruct((out_rows, _OUT_LANES), jnp.float32),
        grid=(num_tiles,),
        in_specs=[
            pl.BlockSpec((tb, D), lambda i: (i, 0)),
            pl.BlockSpec((tb, D), lambda i: (i, 0)),
        ],
        out_specs=pl.BlockSpec((1, _OUT_LANES), out_index_map),
        compiler_params=pltpu.CompilerParams(
            dimension_semantics=("parallel",) if multi_core else ("arbitrary",),
            vmem_limit_bytes=vmem_limit,
        ),
        cost_estimate=pl.CostEstimate(
            flops=8 * B * D,
            transcendentals=B,
            bytes_accessed=2 * B * D * itemsize + out_rows * _OUT_LANES * 4,
        ),
    )(x1, x2)

    if accumulate:
        # Kernel already divided by B on the last grid step.
        return out[0, 0], out[0, 1]
    sums = jnp.sum(out, axis=0)
    inv_b = jnp.float32(1.0 / B)
    return sums[0] * inv_b, sums[1] * inv_b


def _reference(x1, x2):
    x1 = x1.astype(jnp.float32)
    x2 = x2.astype(jnp.float32)
    dot = jnp.sum(x1 * x2, axis=1)
    denom = jnp.maximum(
        jnp.linalg.norm(x1, axis=1) * jnp.linalg.norm(x2, axis=1), _EPS)
    sims = dot / denom
    return jnp.mean(jnp.maximum(sims, 0.0)), jnp.mean(sims)


if __name__ == "__main__":
    key = jax.random.PRNGKey(0)
    k1, k2, k3, k4, k5, k6 = jax.random.split(key, 6)

    # Case 1: small single-tile input, fully auto-tuned config.
    B, D = 8, 32
    x1 = jax.random.normal(k1, (B, D), dtype=jnp.float32)
    x2 = jax.random.normal(k2, (B, D), dtype=jnp.float32)
    got = criterion_inv(x1, x2)
    jax.block_until_ready(got)
    ref = _reference(x1, x2)
    assert jnp.allclose(got[0], ref[0], atol=1e-5, rtol=1e-5)
    assert jnp.allclose(got[1], ref[1], atol=1e-5, rtol=1e-5)

    # Case 2: multi-tile + in-kernel row chunking + padded last tile,
    # single-TC resident-accumulator path (grid axis "arbitrary").
    B2, D2 = 20, 32
    y1 = jax.random.normal(k3, (B2, D2), dtype=jnp.float32)
    y2 = jax.random.normal(k4, (B2, D2), dtype=jnp.float32)
    got2 = criterion_inv(y1, y2, block_rows=16, chunk_rows=8, multi_core=False)
    jax.block_until_ready(got2)
    ref2 = _reference(y1, y2)
    assert jnp.allclose(got2[0], ref2[0], atol=1e-5, rtol=1e-5)
    assert jnp.allclose(got2[1], ref2[1], atol=1e-5, rtol=1e-5)

    # Case 3: same data, per-tile-partials path ("parallel", v7x style).
    got3 = criterion_inv(y1, y2, block_rows=8, chunk_rows=8, multi_core=True)
    jax.block_until_ready(got3)
    assert jnp.allclose(got3[0], ref2[0], atol=1e-5, rtol=1e-5)
    assert jnp.allclose(got3[1], ref2[1], atol=1e-5, rtol=1e-5)

    # Case 4: bf16 inputs (16-row native sublane tile), auto config.
    B4, D4 = 16, 32
    z1 = jax.random.normal(k5, (B4, D4), dtype=jnp.bfloat16)
    z2 = jax.random.normal(k6, (B4, D4), dtype=jnp.bfloat16)
    got4 = criterion_inv(z1, z2)
    jax.block_until_ready(got4)
    ref4 = _reference(z1, z2)
    assert jnp.allclose(got4[0], ref4[0], atol=3e-2)
    assert jnp.allclose(got4[1], ref4[1], atol=3e-2)

    print("KERNEL_OK")
</pallas_src>

<mosaic_0001>
module attributes {stable_mosaic.version = 11 : i64} {
  func.func @_criterion_inv_kernel(%arg0: i32, %arg1: memref<8x32xf32, #tpu.memory_space<vmem>>, %arg2: memref<8x32xf32, #tpu.memory_space<vmem>>, %arg3: memref<1x128xf32, #tpu.memory_space<vmem>>) attributes {dimension_semantics = [#tpu.dimension_semantics<arbitrary>], iteration_bounds = array<i64: 1>, scalar_prefetch = 0 : i64, scratch_operands = 0 : i64, tpu.core_type = #tpu.core_type<tc>, window_params = [{transform_indices = @transform_0, window_bounds = array<i64: 8, 32>}, {transform_indices = @transform_1, window_bounds = array<i64: 8, 32>}, {pipeline_mode = #tpu.pipeline_mode<synchronous>, transform_indices = @transform_2, window_bounds = array<i64: 1, 128>}]} {
    %cst = arith.constant 9.99999993E-9 : f32
    %cst_0 = arith.constant 9.99999993E-9 : f32
    %0 = arith.mulf %cst, %cst_0 : f32
    %c8_i32 = arith.constant 8 : i32
    %1 = arith.muli %arg0, %c8_i32 : i32
    %cst_1 = arith.constant 0.000000e+00 : f32
    %2 = vector.broadcast %cst_1 : f32 to vector<1x1xf32>
    %cst_2 = arith.constant 0.000000e+00 : f32
    %3 = vector.broadcast %cst_2 : f32 to vector<1x1xf32>
    %c0 = arith.constant 0 : index
    %c0_3 = arith.constant 0 : index
    %4 = vector.load %arg1[%c0, %c0_3] : memref<8x32xf32, #tpu.memory_space<vmem>>, vector<8x32xf32>
    %c0_4 = arith.constant 0 : index
    %c0_5 = arith.constant 0 : index
    %5 = vector.load %arg2[%c0_4, %c0_5] : memref<8x32xf32, #tpu.memory_space<vmem>>, vector<8x32xf32>
    %6 = arith.mulf %4, %5 : vector<8x32xf32>
    %cst_6 = arith.constant dense<0.000000e+00> : vector<8xf32>
    %7 = vector.multi_reduction <add>, %6, %cst_6 [1] : vector<8x32xf32> to vector<8xf32>
    %8 = vector.shape_cast %7 : vector<8xf32> to vector<8x1xf32>
    %9 = arith.mulf %4, %4 : vector<8x32xf32>
    %cst_7 = arith.constant dense<0.000000e+00> : vector<8xf32>
    %10 = vector.multi_reduction <add>, %9, %cst_7 [1] : vector<8x32xf32> to vector<8xf32>
    %11 = vector.shape_cast %10 : vector<8xf32> to vector<8x1xf32>
    %12 = arith.mulf %5, %5 : vector<8x32xf32>
    %cst_8 = arith.constant dense<0.000000e+00> : vector<8xf32>
    %13 = vector.multi_reduction <add>, %12, %cst_8 [1] : vector<8x32xf32> to vector<8xf32>
    %14 = vector.shape_cast %13 : vector<8xf32> to vector<8x1xf32>
    %15 = arith.mulf %11, %14 : vector<8x1xf32>
    %16 = vector.broadcast %0 : f32 to vector<8x1xf32>
    %17 = arith.maximumf %15, %16 : vector<8x1xf32>
    %18 = math.rsqrt %17 : vector<8x1xf32>
    %19 = arith.mulf %8, %18 : vector<8x1xf32>
    %20 = tpu.iota {dimensions = array<i32: 0>} : vector<8x1xi32>
    %21 = vector.broadcast %1 : i32 to vector<8x1xi32>
    %22 = arith.addi %21, %20 : vector<8x1xi32>
    %c8_i32_9 = arith.constant 8 : i32
    %23 = vector.broadcast %c8_i32_9 : i32 to vector<8x1xi32>
    %24 = arith.cmpi slt, %22, %23 : vector<8x1xi32>
    %cst_10 = arith.constant 0.000000e+00 : f32
    %25 = vector.broadcast %cst_10 : f32 to vector<8x1xf32>
    %26 = arith.select %24, %19, %25 : vector<8x1xi1>, vector<8x1xf32>
    %cst_11 = arith.constant 0.000000e+00 : f32
    %27 = vector.broadcast %cst_11 : f32 to vector<8x1xf32>
    %28 = arith.maximumf %26, %27 : vector<8x1xf32>
    %29 = vector.shape_cast %28 : vector<8x1xf32> to vector<1x8x1xf32>
    %cst_12 = arith.constant dense<0.000000e+00> : vector<1xf32>
    %30 = vector.multi_reduction <add>, %29, %cst_12 [1, 2] : vector<1x8x1xf32> to vector<1xf32>
    %31 = vector.shape_cast %30 : vector<1xf32> to vector<1x1x1xf32>
    %32 = vector.extract %31[0, 0, 0] : f32 from vector<1x1x1xf32>
    %33 = vector.broadcast %32 : f32 to vector<1x1xf32>
    %34 = arith.addf %2, %33 : vector<1x1xf32>
    %35 = vector.shape_cast %26 : vector<8x1xf32> to vector<1x8x1xf32>
    %cst_13 = arith.constant dense<0.000000e+00> : vector<1xf32>
    %36 = vector.multi_reduction <add>, %35, %cst_13 [1, 2] : vector<1x8x1xf32> to vector<1xf32>
    %37 = vector.shape_cast %36 : vector<1xf32> to vector<1x1x1xf32>
    %38 = vector.extract %37[0, 0, 0] : f32 from vector<1x1x1xf32>
    %39 = vector.broadcast %38 : f32 to vector<1x1xf32>
    %40 = arith.addf %3, %39 : vector<1x1xf32>
    %41 = tpu.iota {dimensions = array<i32: 1>} : vector<1x128xi32>
    %c0_i32 = arith.constant 0 : i32
    %42 = vector.broadcast %c0_i32 : i32 to vector<1x128xi32>
    %43 = arith.cmpi eq, %41, %42 : vector<1x128xi32>
    %cst_14 = arith.constant 0.000000e+00 : f32
    %44 = vector.shape_cast %34 : vector<1x1xf32> to vector<1x1xf32>
    %45 = vector.broadcast %44 : vector<1x1xf32> to vector<1x128xf32>
    %46 = vector.broadcast %cst_14 : f32 to vector<1x128xf32>
    %47 = arith.select %43, %45, %46 : vector<1x128xi1>, vector<1x128xf32>
    %c1_i32 = arith.constant 1 : i32
    %48 = vector.broadcast %c1_i32 : i32 to vector<1x128xi32>
    %49 = arith.cmpi eq, %41, %48 : vector<1x128xi32>
    %cst_15 = arith.constant 0.000000e+00 : f32
    %50 = vector.shape_cast %40 : vector<1x1xf32> to vector<1x1xf32>
    %51 = vector.broadcast %50 : vector<1x1xf32> to vector<1x128xf32>
    %52 = vector.broadcast %cst_15 : f32 to vector<1x128xf32>
    %53 = arith.select %49, %51, %52 : vector<1x128xi1>, vector<1x128xf32>
    %54 = arith.addf %47, %53 : vector<1x128xf32>
    %c0_i32_16 = arith.constant 0 : i32
    %55 = arith.cmpi eq, %arg0, %c0_i32_16 : i32
    %56 = arith.extui %55 : i1 to i32
    %c0_i32_17 = arith.constant 0 : i32
    %57 = arith.cmpi ne, %56, %c0_i32_17 : i32
    scf.if %57 {
      %cst_24 = arith.constant 0.000000e+00 : f32
      %64 = vector.broadcast %cst_24 : f32 to vector<1x128xf32>
      %c0_25 = arith.constant 0 : index
      %c0_26 = arith.constant 0 : index
      %65 = vector.load %arg3[%c0_25, %c0_26] : memref<1x128xf32, #tpu.memory_space<vmem>>, vector<1x128xf32>
      tpu.vector_store %arg3[%c0_25, %c0_26], %64 {strides = array<i32>} : memref<1x128xf32, #tpu.memory_space<vmem>>, vector<1x128xf32>,
    } else {
    }
    %c0_18 = arith.constant 0 : index
    %c0_19 = arith.constant 0 : index
    %58 = vector.load %arg3[%c0_18, %c0_19] : memref<1x128xf32, #tpu.memory_space<vmem>>, vector<1x128xf32>
    %59 = arith.addf %58, %54 : vector<1x128xf32>
    %c0_20 = arith.constant 0 : index
    %c0_21 = arith.constant 0 : index
    %60 = vector.load %arg3[%c0_20, %c0_21] : memref<1x128xf32, #tpu.memory_space<vmem>>, vector<1x128xf32>
    tpu.vector_store %arg3[%c0_20, %c0_21], %59 {strides = array<i32>} : memref<1x128xf32, #tpu.memory_space<vmem>>, vector<1x128xf32>,
    %c0_i32_22 = arith.constant 0 : i32
    %61 = arith.cmpi eq, %arg0, %c0_i32_22 : i32
    %62 = arith.extui %61 : i1 to i32
    %c0_i32_23 = arith.constant 0 : i32
    %63 = arith.cmpi ne, %62, %c0_i32_23 : i32
    scf.if %63 {
      %c0_24 = arith.constant 0 : index
      %c0_25 = arith.constant 0 : index
      %64 = vector.load %arg3[%c0_24, %c0_25] : memref<1x128xf32, #tpu.memory_space<vmem>>, vector<1x128xf32>
      %cst_26 = arith.constant 1.250000e-01 : f32
      %65 = vector.broadcast %cst_26 : f32 to vector<1x128xf32>
      %66 = arith.mulf %64, %65 : vector<1x128xf32>
      %c0_27 = arith.constant 0 : index
      %c0_28 = arith.constant 0 : index
      %67 = vector.load %arg3[%c0_27, %c0_28] : memref<1x128xf32, #tpu.memory_space<vmem>>, vector<1x128xf32>
      tpu.vector_store %arg3[%c0_27, %c0_28], %66 {strides = array<i32>} : memref<1x128xf32, #tpu.memory_space<vmem>>, vector<1x128xf32>,
    } else {
    }
    return
  }
  func.func @transform_0(%arg0: i32) -> (i32, i32) {
    %c0_i32 = arith.constant 0 : i32
    %c0_i32_0 = arith.constant 0 : i32
    return %arg0, %c0_i32 : i32, i32
  }
  func.func @transform_1(%arg0: i32) -> (i32, i32) {
    %c0_i32 = arith.constant 0 : i32
    %c0_i32_0 = arith.constant 0 : i32
    return %arg0, %c0_i32 : i32, i32
  }
  func.func @transform_2(%arg0: i32) -> (i32, i32) {
    %c0_i32 = arith.constant 0 : i32
    %c0_i32_0 = arith.constant 0 : i32
    %c0_i32_1 = arith.constant 0 : i32
    return %c0_i32, %c0_i32_0 : i32, i32
  }
}

</mosaic_0001>

<bundles_post_ra>
// kernel: tpu_custom_call.1
= control target key start
LH: loop header
LB: loop body
LE: loop exit
PB: predicated region body
PF: predicated region fallthrough
CT: control target
= control target key end

     0   :  { %7 = vsyncpa [#allocation3], 0  ;;  %s229_s0 = inlined_call_operand.hbm [shape: f32[8,32], index: 0, kind: input, shape index: {}]   ;;  %s230_s1 = inlined_call_operand.hbm [shape: f32[8,32], index: 1, kind: input, shape index: {}]   ;;  %s231_s2 = inlined_call_operand.hbm [shape: f32[1,128], index: 2, kind: output, shape index: {}]  }
   0x1   :  { %8 = vsyncpa [#allocation6], 0 }
   0x2   :  { %9 = vsyncpa [#allocation4], 0  ;;  %s201_s9 = smov [#allocation2]   ;;  %s202_s11 = smov [#allocation5]  }
   0x3   :  { %s16_s10 = sshll.u32 %s201_s9, 4  ;;  %s26_s12 = sshll.u32 %s202_s11, 4  ;;  %s17_s10 = int_to_ptr.vmem [resolvable:$true] %s16_s10  ;;  %s27_s12 = int_to_ptr.vmem [resolvable:$true] %s26_s12 }
   0x4   :  { %s143_s13 = scalar_lea.vmem %s17_s10, 128  ;;  %p148_p1 = scmp.lt.s32.totalorder %s17_s10, %s17_s10 }
   0x5   :  { %p144_p0 = scmp.ne.s32.totalorder %s17_s10, %s143_s13  ;;  %p149_p2 = scmp.lt.s32.totalorder %s143_s13, %s143_s13 }
   0x7   :  { %p150_p3 = por %p149_p2, %p148_p1 }
   0x9   :  { %p151_p4 = pnand %p150_p3, %p144_p0 }
   0xb   :  { %154 = shalt.err (!%p151_p4)
}
   0xc   :  { %19 = dma.hbm_to_vmem [thread:$0]  %s229_s0, 128, %s17_s10, [#allocation3]  }
   0xd   :  { %s163_s16 = scalar_lea.vmem %s27_s12, 128  ;;  %p168_p6 = scmp.lt.s32.totalorder %s27_s12, %s27_s12 }
   0xe   :  { %p164_p5 = scmp.ne.s32.totalorder %s27_s12, %s163_s16  ;;  %p169_p7 = scmp.lt.s32.totalorder %s163_s16, %s163_s16 }
  0x10   :  { %p170_p8 = por %p169_p7, %p168_p6 }
  0x12   :  { %p171_p9 = pnand %p170_p8, %p164_p5 }
  0x14   :  { %174 = shalt.err (!%p171_p9)
}
  0x15   :  { %29 = dma.hbm_to_vmem [thread:$0]  %s230_s1, 128, %s27_s12, [#allocation6]  }
  0x16   :  { %195 = dma.done.wait [#allocation3], 128  }
  0x17   :  { %196 = vsyncadd [#allocation3], 4294967168 }
  0x18   :  { %197 = dma.done.wait [#allocation6], 128  }
  0x19   :  { %198 = vsyncadd [#allocation6], 4294967168  ;;  %v203_v0 = vmov 0.0   ;;  %v37_v1 = vld [vmem:[#allocation2] sm:$0xff]  ;;  %vm40_vm0 = vcmask 261120   ;;  %v38_v2 = vld [vmem:[#allocation5] sm:$0xff]  ;;  %v88_v33 = vlaneseq }
  0x1a   :  { %99 = vst [vmem:[#allocation7] sm:$0x1] %v203_v0  ;;  %v44_v3 = vmul.f32 %v37_v1, %v37_v1  ;;  %v48_v4 = vmul.f32 %v38_v2, %v38_v2  ;;  %v39_v5 = vmul.f32 %v38_v2, %v37_v1  ;;  %vm63_vm1 = vcmask 7168   ;;  %s204_s19 = smov [#allocation7]  }
  0x1b   :  { %v89_v34 = vand.u32 127, %v88_v33  ;;  %s115_s20 = sshll.u32 %s204_s19, 4  ;;  %s116_s20 = int_to_ptr.vmem [resolvable:$true] %s115_s20 }
  0x1c   :  { %v45_v6 = vsel %vm40_vm0, %v44_v3, 0.0  ;;  %v41_v7 = vsel %vm40_vm0, %v39_v5, 0.0  ;;  %v49_v8 = vsel %vm40_vm0, %v48_v4, 0.0  ;;  %s175_s21 = scalar_lea.vmem %s116_s20, 16  ;;  %s179_s22 = scalar_lea.vmem %s116_s20, 32 }
  0x1d   :  { %46 = vadd.xlane.f32.xlu0 %v45_v6  ;;  %42 = vadd.xlane.f32.xlu1 %v41_v7  ;;  %vm90_vm2 = vcmp.eq.s32.totalorder %v89_v34, 0  ;;  %vm92_vm3 = vcmp.eq.s32.totalorder %v89_v34, 1  ;;  %p176_p10 = scmp.ne.s32.totalorder %s116_s20, %s175_s21  ;;  %p180_p11 = scmp.lt.s32.totalorder %s116_s20, %s116_s20 }
  0x1e   :  { %p181_p12 = scmp.lt.s32.totalorder %s179_s22, %s175_s21 }
  0x20   :  { %p182_p13 = por %p181_p12, %p180_p11 }
  0x21   :  { %50 = vadd.xlane.f32.xlu0 %v49_v8  ;;  %v100_v39 = vld [vmem:[#allocation7] sm:$0x1] }
  0x22   :  { %p183_p0 = pnand %p182_p13, %p176_p10 }
  0xa6   :  { %v47_v9 = vpop.xlane.xlu0 %46  ;;  %v43_v13 = vpop.xlane.xlu1 %42 }
  0xaa   :  { %v51_v10 = vpop.xlane.xlu0 %50 }
  0xab   :  { %v52_v11 = vmul.f32 %v51_v10, %v47_v9 }
  0xad   :  { %v53_v12 = vmax.f32 %v52_v11, 1e-16 }
  0xaf   :  { %133 = vrsqrt.f32 %v53_v12 }
  0xbc   :  { %v134_v14 = vpop.eup %133 }
  0xbd   :  { %v55_v15 = vmul.f32 %v134_v14, %v43_v13 }
  0xbf   :  { %v76_v16 = vsel %vm63_vm1, %v55_v15, 0.0  ;;  %v62_v17 = vmax.f32 %v55_v15, 0.0 }
  0xc0   :  { %77 = vadd.xlane.f32.xlu0 %v76_v16 }
  0xc1   :  { %v64_v18 = vsel %vm63_vm1, %v62_v17, 0.0 }
  0xc2   :  { %65 = vadd.xlane.f32.xlu1 %v64_v18 }
 0x149   :  { %v78_v19 = vpop.xlane.xlu0 %77 }
 0x14a   :  { %v79_v20 = vrot.slane %v78_v19, 4 }
 0x14b   :  { %v66_v21 = vpop.xlane.xlu1 %65 }
 0x14c   :  { %v80_v22 = vadd.f32 %v79_v20, %v78_v19  ;;  %v67_v23 = vrot.slane %v66_v21, 4 }
 0x14e   :  { %v81_v24 = vrot.slane %v80_v22, 2  ;;  %v68_v25 = vadd.f32 %v67_v23, %v66_v21 }
 0x150   :  { %v82_v26 = vadd.f32 %v81_v24, %v80_v22  ;;  %v69_v27 = vrot.slane %v68_v25, 2 }
 0x152   :  { %v70_v28 = vadd.f32 %v69_v27, %v68_v25  ;;  %v83_v29 = vrot.slane %v82_v26, 1 }
 0x154   :  { %v71_v30 = vrot.slane %v70_v28, 1  ;;  %v84_v32 = vadd.f32 %v83_v29, %v82_v26 }
 0x156   :  { %v72_v31 = vadd.f32 %v71_v30, %v70_v28 }
 0x158   :  { %125 = vpush %v72_v31 }
 0x159   :  { %127 = vpush %v84_v32 }
 0x189   :  { %s126_s0 = spop %125 }
 0x18a   :  { %v74_v35 = vstv %s126_s0  ;;  %s128_s1 = spop %127 }
 0x18b   :  { %v91_v36 = vsel %vm90_vm2, %v74_v35, 0.0  ;;  %v86_v37 = vstv %s128_s1 }
 0x18c   :  { %v93_v38 = vsel %vm92_vm3, %v86_v37, 0.0 }
 0x18d   :  { %v94_v40 = vadd.f32 %v93_v38, %v91_v36 }
 0x18f   :  { %v101_v41 = vadd.f32 %v100_v39, %v94_v40 }
 0x191   :  { %102 = vst [vmem:[#allocation7] sm:$0x1] %v101_v41 }
 0x198   :  { %v106_v42 = vld [vmem:[#allocation7] sm:$0x1] }
 0x199   :  { %v107_v43 = vmul.f32 0.125, %v106_v42 }
 0x19b   :  { %108 = vst [vmem:[#allocation7] sm:$0x1] %v107_v43 }
 0x19c   :  { %186 = shalt.err (!%p183_p0)
}
 0x19d   :  { %118 = dma.vmem_to_hbm [thread:$0]  %s116_s20, 16, %s231_s2, [#allocation4]  }
 0x19e   :  { %199 = dma.done.wait [#allocation4], 16  }
 0x19f   :  { %200 = vsyncadd [#allocation4], 4294967280 }
 0x1a0   :  { %122 = vsyncpa [#allocation3], 1 }
 0x1a1   :  { %123 = vsyncpa [#allocation6], 1 }
 0x1a2   :  { %124 = vsyncpa [#allocation4], 1 }

</bundles_post_ra>
